<compile_context>
chip_gen: v5e
topology: v5e:2x2
jax: 0.10.0
libtpu: 0.0.40
codegen_flags: <defaults>
</compile_context>

<pallas_src>
import jax
import jax.numpy as jnp
from jax import lax
from jax.experimental import pallas as pl
from jax.experimental.pallas import tpu as pltpu

BOS_IDX = 0
EOS_IDX = 1
NEG_INF = -10000.0


# ------------------------------- kernel body ---------------------------------

def _make_crf_kernel(t_eff, t_block, bt, n_labels, unroll, use_mxu):
    L = n_labels
    tail = t_eff % t_block  # static: length of the ragged last T-chunk (0 == none)

    def kernel(score_ref, trans_ref, eos_ref, out_ref, alpha_ref):
        # score_ref: (t_block, L, bt) bf16/f32 -- labels on sublanes, batch on lanes
        # trans_ref: (L, L) f32              -- trans[i, j]
        # eos_ref:   (L, 1) f32              -- trans[EOS, i] as a sublane column
        # out_ref:   (1, bt) f32             -- lane-dense norm output
        # alpha_ref: (L, bt) f32 scratch carried across the T-chunk grid axis
        c = pl.program_id(1)
        n_chunks = pl.num_programs(1)

        trans = trans_ref[...].astype(jnp.float32)
        # Exp-space transition matrix, hoisted once per grid step.
        # exp(-10000) underflows to exactly 0 (forbidden transitions).
        if use_mxu:
            e_bf = jnp.exp(trans).astype(jnp.bfloat16)                 # (L, L)
        else:
            # Small-L VPU path: hoist the lane-dense broadcast out of the loop
            # (JAX does not CSE broadcast_in_dim inside the unrolled loop).
            e_3d = jnp.broadcast_to(jnp.exp(trans)[:, :, None], (L, L, bt))

        @pl.when(c == 0)
        def _init():
            lab = lax.broadcasted_iota(jnp.int32, (L, bt), 0)
            alpha_ref[...] = jnp.where(
                lab == BOS_IDX, jnp.float32(0.0), jnp.float32(NEG_INF))

        def step(t, alpha):
            # alpha: (L_j, B) carry; one timestep read straight off the ref.
            logit = score_ref[t].astype(jnp.float32)                   # (L, B)
            # Shared per-column shift: one (L,B)->(1,B) sublane reduce reused
            # for every destination label i (instead of a per-i max).
            m = jnp.max(alpha, axis=0, keepdims=True)                  # (1, B)
            p = jnp.exp(alpha - m)                                     # (L, B)
            if use_mxu:
                s = jnp.dot(e_bf, p.astype(jnp.bfloat16),
                            preferred_element_type=jnp.float32)        # (L, B)
            else:
                s = jnp.sum(e_3d * p[None, :, :], axis=1)              # (L, B)
            return logit + m + jnp.log(s)

        if tail == 0:
            # Every chunk is full: single unmasked loop.
            alpha_ref[...] = lax.fori_loop(
                0, t_block, step, alpha_ref[...], unroll=unroll)
        else:
            @pl.when(c < n_chunks - 1)
            def _full_chunk():
                alpha_ref[...] = lax.fori_loop(
                    0, t_block, step, alpha_ref[...], unroll=unroll)

            @pl.when(c == n_chunks - 1)
            def _tail_chunk():
                u = True if tail <= 16 else unroll
                # Static trip count == remaining valid steps; the padded rows of
                # the partial last block are simply never read.
                alpha_ref[...] = lax.fori_loop(
                    0, tail, step, alpha_ref[...], unroll=u)

        @pl.when(c == n_chunks - 1)
        def _finalize():
            a = alpha_ref[...] + eos_ref[...]                          # (L, B)
            mx = jnp.max(a, axis=0, keepdims=True)                     # (1, B)
            norm = mx + jnp.log(jnp.sum(jnp.exp(a - mx), axis=0, keepdims=True))
            out_ref[...] = norm                                        # (1, B)

    return kernel


# --------------------------------- wrapper ------------------------------------

def _vmem_capacity_bytes():
    try:
        cap = getattr(pltpu.get_tpu_info(), "vmem_capacity_bytes", None)
        if cap:
            return int(cap)
    except Exception:
        pass
    return 64 << 20  # conservative fallback (v7x per-core VMEM)


def _derive_t_block(t_eff, n_labels, bt, itemsize, budget_bytes):
    """Largest T-chunk whose double-buffered score window fits the budget."""
    pack = {4: 8, 2: 16, 1: 32}[itemsize]            # sublane packing
    l_pad = ((n_labels + pack - 1) // pack) * pack
    per_t = l_pad * bt * itemsize                    # bytes per timestep / buffer
    tb = max(1, budget_bytes // (2 * per_t))
    return int(min(tb, t_eff))


def crf_forward(score, trans, *, score_dtype=jnp.bfloat16, t_block=None, unroll=8):
    """score: (B, T_full, L); trans: (L, L) -> log-partition norm: (B,) float32."""
    B, t_full, L = score.shape
    assert t_full >= 3, "forward consumes score[:, 1:-1, :]"
    assert trans.shape == (L, L)
    t_eff = t_full - 2

    bt = 128                                          # lane tile (always full)
    b_pad = ((B + bt - 1) // bt) * bt
    nb = b_pad // bt

    # One fused staging copy: time slice + layout transpose + cast + batch pad.
    # TODO(synk): emit (T, L, B) bf16 directly from the emission producer.
    score_stream = jnp.transpose(score[:, 1:-1, :].astype(score_dtype), (1, 2, 0))
    if b_pad != B:
        score_stream = jnp.pad(score_stream, ((0, 0), (0, 0), (0, b_pad - B)))

    itemsize = jnp.dtype(score_dtype).itemsize
    vmem_cap = _vmem_capacity_bytes()
    # Budget for the double-buffered score window; leave headroom for trans,
    # the alpha scratch and compiler-internal scratch.
    score_budget = int(min(max(vmem_cap - (24 << 20), 16 << 20), 80 << 20))
    if t_block is None:
        tb = _derive_t_block(t_eff, L, bt, itemsize, score_budget)
    else:
        tb = min(int(t_block), t_eff)
    nc = pl.cdiv(t_eff, tb)
    unroll_eff = True if tb <= 16 else unroll
    use_mxu = L >= 32

    pack = {4: 8, 2: 16, 1: 32}[itemsize]
    l_pad = ((L + pack - 1) // pack) * pack
    score_block_bytes = tb * l_pad * bt * itemsize
    needed = 2 * score_block_bytes + (4 << 20)
    vmem_limit = int(min(max(needed, 32 << 20), max(vmem_cap - (8 << 20), 32 << 20)))

    trans_f32 = trans.astype(jnp.float32)
    trans_eos = trans_f32[EOS_IDX, :].reshape(L, 1)   # tiny side input for finalize

    kernel = _make_crf_kernel(t_eff, tb, bt, L, unroll_eff, use_mxu)

    out = pl.pallas_call(
        kernel,
        out_shape=jax.ShapeDtypeStruct((1, b_pad), jnp.float32),
        grid_spec=pltpu.PrefetchScalarGridSpec(
            num_scalar_prefetch=0,
            grid=(nb, nc),
            in_specs=[
                pl.BlockSpec((tb, L, bt), lambda b, c: (c, 0, b)),
                pl.BlockSpec((L, L), lambda b, c: (0, 0)),
                pl.BlockSpec((L, 1), lambda b, c: (0, 0)),
            ],
            out_specs=pl.BlockSpec((1, bt), lambda b, c: (0, b)),
            scratch_shapes=[pltpu.VMEM((L, bt), jnp.float32)],
        ),
        compiler_params=pltpu.CompilerParams(
            dimension_semantics=("parallel", "arbitrary"),
            vmem_limit_bytes=vmem_limit,
        ),
    )(score_stream, trans_f32, trans_eos)
    return out[0, :B]


# ----------------------------- reference / init ------------------------------

def _logsumexp_last(v):
    m = jnp.max(v, axis=-1)
    return m + jnp.log(jnp.sum(jnp.exp(v - m[..., None]), axis=-1))


def make_trans_weight(num_label):
    """Deterministic init mirroring CRF.__init__ (ones + BOS/EOS masking)."""
    L = num_label + 2
    trans = jnp.ones((L, L), dtype=jnp.float32)
    trans = trans.at[BOS_IDX, :].set(NEG_INF)
    trans = trans.at[:, EOS_IDX].set(NEG_INF)
    return trans


def crf_forward_ref(score, trans):
    """Pure-JAX reference mirroring the PyTorch loop (f32 log-space)."""
    score = score[:, 1:-1, :]
    B, T, L = score.shape
    alpha = jnp.full((B, L), NEG_INF, dtype=jnp.float32).at[:, BOS_IDX].set(0.0)
    for t in range(T):
        logit = score[:, t, :]
        mat = trans[None, :, :] + alpha[:, None, :] + logit[:, :, None]
        alpha = _logsumexp_last(mat)
    alpha = alpha + trans[EOS_IDX][None, :]
    return _logsumexp_last(alpha)


if __name__ == "__main__":
    num_label = 4              # -> L = num_label + 2 = 6
    L = num_label + 2
    batch = 2
    seq_full = 10              # forward uses timesteps 1..8 (i.e. [:, 1:-1, :])

    key = jax.random.PRNGKey(0)
    score = jax.random.normal(key, (batch, seq_full, L), dtype=jnp.float32)
    trans = make_trans_weight(num_label)

    norm = crf_forward(score, trans)
    norm = jax.block_until_ready(norm)
    assert norm.shape == (batch,)

    # Tight check against a reference fed the same bf16-rounded emissions the
    # kernel streams (validates the kernel math itself).
    score_bf = score.astype(jnp.bfloat16).astype(jnp.float32)
    ref_bf = crf_forward_ref(score_bf, trans)
    assert jnp.allclose(norm, ref_bf, rtol=1e-4, atol=1e-3), (norm, ref_bf)

    # Loose sanity check against the exact f32 reference (difference is purely
    # the bf16 quantization of the streamed emission scores).
    ref_f32 = crf_forward_ref(score, trans)
    assert jnp.allclose(norm, ref_f32, rtol=2e-2, atol=1e-1), (norm, ref_f32)

    print("KERNEL_OK")
</pallas_src>

<mosaic_0001>
module attributes {stable_mosaic.version = 11 : i64} {
  func.func @kernel(%arg0: i32, %arg1: i32, %arg2: memref<8x6x128xbf16, #tpu.memory_space<vmem>>, %arg3: memref<6x6xf32, #tpu.memory_space<vmem>>, %arg4: memref<6x1xf32, #tpu.memory_space<vmem>>, %arg5: memref<1x128xf32, #tpu.memory_space<vmem>>, %arg6: memref<6x128xf32, #tpu.memory_space<vmem>>) attributes {dimension_semantics = [#tpu.dimension_semantics<parallel>, #tpu.dimension_semantics<arbitrary>], iteration_bounds = array<i64: 1, 1>, scalar_prefetch = 0 : i64, scratch_operands = 1 : i64, tpu.core_type = #tpu.core_type<tc>, window_params = [{transform_indices = @transform_0, window_bounds = array<i64: 8, 6, 128>}, {pipeline_mode = #tpu.pipeline_mode<synchronous>, transform_indices = @transform_1, window_bounds = array<i64: 6, 6>}, {pipeline_mode = #tpu.pipeline_mode<synchronous>, transform_indices = @transform_2, window_bounds = array<i64: 6, 1>}, {transform_indices = @transform_3, window_bounds = array<i64: 1, 128>}]} {
    %c0 = arith.constant 0 : index
    %c0_0 = arith.constant 0 : index
    %0 = vector.load %arg3[%c0, %c0_0] : memref<6x6xf32, #tpu.memory_space<vmem>>, vector<6x6xf32>
    %1 = math.exp %0 : vector<6x6xf32>
    %2 = vector.shape_cast %1 : vector<6x6xf32> to vector<6x6x1xf32>
    %3 = vector.shape_cast %2 : vector<6x6x1xf32> to vector<6x6x1xf32>
    %4 = vector.broadcast %3 : vector<6x6x1xf32> to vector<6x6x128xf32>
    %c0_i32 = arith.constant 0 : i32
    %5 = arith.cmpi eq, %arg1, %c0_i32 : i32
    %6 = arith.extui %5 : i1 to i32
    %c0_i32_1 = arith.constant 0 : i32
    %7 = arith.cmpi ne, %6, %c0_i32_1 : i32
    scf.if %7 {
      %149 = tpu.iota {dimensions = array<i32: 0>} : vector<6x128xi32>
      %c0_i32_40 = arith.constant 0 : i32
      %150 = vector.broadcast %c0_i32_40 : i32 to vector<6x128xi32>
      %151 = arith.cmpi eq, %149, %150 : vector<6x128xi32>
      %cst_41 = arith.constant 0.000000e+00 : f32
      %cst_42 = arith.constant -1.000000e+04 : f32
      %152 = vector.broadcast %cst_41 : f32 to vector<6x128xf32>
      %153 = vector.broadcast %cst_42 : f32 to vector<6x128xf32>
      %154 = arith.select %151, %152, %153 : vector<6x128xi1>, vector<6x128xf32>
      %c0_43 = arith.constant 0 : index
      %c0_44 = arith.constant 0 : index
      %155 = vector.load %arg6[%c0_43, %c0_44] : memref<6x128xf32, #tpu.memory_space<vmem>>, vector<6x128xf32>
      tpu.vector_store %arg6[%c0_43, %c0_44], %154 {strides = array<i32>} : memref<6x128xf32, #tpu.memory_space<vmem>>, vector<6x128xf32>,
    } else {
    }
    %c0_2 = arith.constant 0 : index
    %c0_3 = arith.constant 0 : index
    %8 = vector.load %arg6[%c0_2, %c0_3] : memref<6x128xf32, #tpu.memory_space<vmem>>, vector<6x128xf32>
    %c0_i32_4 = arith.constant 0 : i32
    %9 = arith.index_cast %c0_i32_4 : i32 to index
    %c0_5 = arith.constant 0 : index
    %c0_6 = arith.constant 0 : index
    %10 = vector.load %arg2[%9, %c0_5, %c0_6] : memref<8x6x128xbf16, #tpu.memory_space<vmem>>, vector<1x6x128xbf16>
    %11 = vector.shape_cast %10 : vector<1x6x128xbf16> to vector<6x128xbf16>
    %12 = arith.extf %11 : vector<6x128xbf16> to vector<6x128xf32>
    %cst = arith.constant dense<0xFF800000> : vector<128xf32>
    %13 = vector.multi_reduction <maximumf>, %8, %cst [0] : vector<6x128xf32> to vector<128xf32>
    %14 = vector.shape_cast %13 : vector<128xf32> to vector<1x128xf32>
    %15 = vector.broadcast %14 : vector<1x128xf32> to vector<6x128xf32>
    %16 = arith.subf %8, %15 : vector<6x128xf32>
    %17 = math.exp %16 : vector<6x128xf32>
    %18 = vector.shape_cast %17 : vector<6x128xf32> to vector<1x6x128xf32>
    %19 = vector.broadcast %18 : vector<1x6x128xf32> to vector<6x6x128xf32>
    %20 = arith.mulf %4, %19 : vector<6x6x128xf32>
    %cst_7 = arith.constant dense<0.000000e+00> : vector<6x128xf32>
    %21 = vector.multi_reduction <add>, %20, %cst_7 [1] : vector<6x6x128xf32> to vector<6x128xf32>
    %22 = vector.broadcast %14 : vector<1x128xf32> to vector<6x128xf32>
    %23 = arith.addf %12, %22 : vector<6x128xf32>
    %24 = math.log %21 : vector<6x128xf32>
    %25 = arith.addf %23, %24 : vector<6x128xf32>
    %c1_i32 = arith.constant 1 : i32
    %26 = arith.index_cast %c1_i32 : i32 to index
    %c0_8 = arith.constant 0 : index
    %c0_9 = arith.constant 0 : index
    %27 = vector.load %arg2[%26, %c0_8, %c0_9] : memref<8x6x128xbf16, #tpu.memory_space<vmem>>, vector<1x6x128xbf16>
    %28 = vector.shape_cast %27 : vector<1x6x128xbf16> to vector<6x128xbf16>
    %29 = arith.extf %28 : vector<6x128xbf16> to vector<6x128xf32>
    %cst_10 = arith.constant dense<0xFF800000> : vector<128xf32>
    %30 = vector.multi_reduction <maximumf>, %25, %cst_10 [0] : vector<6x128xf32> to vector<128xf32>
    %31 = vector.shape_cast %30 : vector<128xf32> to vector<1x128xf32>
    %32 = vector.broadcast %31 : vector<1x128xf32> to vector<6x128xf32>
    %33 = arith.subf %25, %32 : vector<6x128xf32>
    %34 = math.exp %33 : vector<6x128xf32>
    %35 = vector.shape_cast %34 : vector<6x128xf32> to vector<1x6x128xf32>
    %36 = vector.broadcast %35 : vector<1x6x128xf32> to vector<6x6x128xf32>
    %37 = arith.mulf %4, %36 : vector<6x6x128xf32>
    %cst_11 = arith.constant dense<0.000000e+00> : vector<6x128xf32>
    %38 = vector.multi_reduction <add>, %37, %cst_11 [1] : vector<6x6x128xf32> to vector<6x128xf32>
    %39 = vector.broadcast %31 : vector<1x128xf32> to vector<6x128xf32>
    %40 = arith.addf %29, %39 : vector<6x128xf32>
    %41 = math.log %38 : vector<6x128xf32>
    %42 = arith.addf %40, %41 : vector<6x128xf32>
    %c2_i32 = arith.constant 2 : i32
    %43 = arith.index_cast %c2_i32 : i32 to index
    %c0_12 = arith.constant 0 : index
    %c0_13 = arith.constant 0 : index
    %44 = vector.load %arg2[%43, %c0_12, %c0_13] : memref<8x6x128xbf16, #tpu.memory_space<vmem>>, vector<1x6x128xbf16>
    %45 = vector.shape_cast %44 : vector<1x6x128xbf16> to vector<6x128xbf16>
    %46 = arith.extf %45 : vector<6x128xbf16> to vector<6x128xf32>
    %cst_14 = arith.constant dense<0xFF800000> : vector<128xf32>
    %47 = vector.multi_reduction <maximumf>, %42, %cst_14 [0] : vector<6x128xf32> to vector<128xf32>
    %48 = vector.shape_cast %47 : vector<128xf32> to vector<1x128xf32>
    %49 = vector.broadcast %48 : vector<1x128xf32> to vector<6x128xf32>
    %50 = arith.subf %42, %49 : vector<6x128xf32>
    %51 = math.exp %50 : vector<6x128xf32>
    %52 = vector.shape_cast %51 : vector<6x128xf32> to vector<1x6x128xf32>
    %53 = vector.broadcast %52 : vector<1x6x128xf32> to vector<6x6x128xf32>
    %54 = arith.mulf %4, %53 : vector<6x6x128xf32>
    %cst_15 = arith.constant dense<0.000000e+00> : vector<6x128xf32>
    %55 = vector.multi_reduction <add>, %54, %cst_15 [1] : vector<6x6x128xf32> to vector<6x128xf32>
    %56 = vector.broadcast %48 : vector<1x128xf32> to vector<6x128xf32>
    %57 = arith.addf %46, %56 : vector<6x128xf32>
    %58 = math.log %55 : vector<6x128xf32>
    %59 = arith.addf %57, %58 : vector<6x128xf32>
    %c3_i32 = arith.constant 3 : i32
    %60 = arith.index_cast %c3_i32 : i32 to index
    %c0_16 = arith.constant 0 : index
    %c0_17 = arith.constant 0 : index
    %61 = vector.load %arg2[%60, %c0_16, %c0_17] : memref<8x6x128xbf16, #tpu.memory_space<vmem>>, vector<1x6x128xbf16>
    %62 = vector.shape_cast %61 : vector<1x6x128xbf16> to vector<6x128xbf16>
    %63 = arith.extf %62 : vector<6x128xbf16> to vector<6x128xf32>
    %cst_18 = arith.constant dense<0xFF800000> : vector<128xf32>
    %64 = vector.multi_reduction <maximumf>, %59, %cst_18 [0] : vector<6x128xf32> to vector<128xf32>
    %65 = vector.shape_cast %64 : vector<128xf32> to vector<1x128xf32>
    %66 = vector.broadcast %65 : vector<1x128xf32> to vector<6x128xf32>
    %67 = arith.subf %59, %66 : vector<6x128xf32>
    %68 = math.exp %67 : vector<6x128xf32>
    %69 = vector.shape_cast %68 : vector<6x128xf32> to vector<1x6x128xf32>
    %70 = vector.broadcast %69 : vector<1x6x128xf32> to vector<6x6x128xf32>
    %71 = arith.mulf %4, %70 : vector<6x6x128xf32>
    %cst_19 = arith.constant dense<0.000000e+00> : vector<6x128xf32>
    %72 = vector.multi_reduction <add>, %71, %cst_19 [1] : vector<6x6x128xf32> to vector<6x128xf32>
    %73 = vector.broadcast %65 : vector<1x128xf32> to vector<6x128xf32>
    %74 = arith.addf %63, %73 : vector<6x128xf32>
    %75 = math.log %72 : vector<6x128xf32>
    %76 = arith.addf %74, %75 : vector<6x128xf32>
    %c4_i32 = arith.constant 4 : i32
    %77 = arith.index_cast %c4_i32 : i32 to index
    %c0_20 = arith.constant 0 : index
    %c0_21 = arith.constant 0 : index
    %78 = vector.load %arg2[%77, %c0_20, %c0_21] : memref<8x6x128xbf16, #tpu.memory_space<vmem>>, vector<1x6x128xbf16>
    %79 = vector.shape_cast %78 : vector<1x6x128xbf16> to vector<6x128xbf16>
    %80 = arith.extf %79 : vector<6x128xbf16> to vector<6x128xf32>
    %cst_22 = arith.constant dense<0xFF800000> : vector<128xf32>
    %81 = vector.multi_reduction <maximumf>, %76, %cst_22 [0] : vector<6x128xf32> to vector<128xf32>
    %82 = vector.shape_cast %81 : vector<128xf32> to vector<1x128xf32>
    %83 = vector.broadcast %82 : vector<1x128xf32> to vector<6x128xf32>
    %84 = arith.subf %76, %83 : vector<6x128xf32>
    %85 = math.exp %84 : vector<6x128xf32>
    %86 = vector.shape_cast %85 : vector<6x128xf32> to vector<1x6x128xf32>
    %87 = vector.broadcast %86 : vector<1x6x128xf32> to vector<6x6x128xf32>
    %88 = arith.mulf %4, %87 : vector<6x6x128xf32>
    %cst_23 = arith.constant dense<0.000000e+00> : vector<6x128xf32>
    %89 = vector.multi_reduction <add>, %88, %cst_23 [1] : vector<6x6x128xf32> to vector<6x128xf32>
    %90 = vector.broadcast %82 : vector<1x128xf32> to vector<6x128xf32>
    %91 = arith.addf %80, %90 : vector<6x128xf32>
    %92 = math.log %89 : vector<6x128xf32>
    %93 = arith.addf %91, %92 : vector<6x128xf32>
    %c5_i32 = arith.constant 5 : i32
    %94 = arith.index_cast %c5_i32 : i32 to index
    %c0_24 = arith.constant 0 : index
    %c0_25 = arith.constant 0 : index
    %95 = vector.load %arg2[%94, %c0_24, %c0_25] : memref<8x6x128xbf16, #tpu.memory_space<vmem>>, vector<1x6x128xbf16>
    %96 = vector.shape_cast %95 : vector<1x6x128xbf16> to vector<6x128xbf16>
    %97 = arith.extf %96 : vector<6x128xbf16> to vector<6x128xf32>
    %cst_26 = arith.constant dense<0xFF800000> : vector<128xf32>
    %98 = vector.multi_reduction <maximumf>, %93, %cst_26 [0] : vector<6x128xf32> to vector<128xf32>
    %99 = vector.shape_cast %98 : vector<128xf32> to vector<1x128xf32>
    %100 = vector.broadcast %99 : vector<1x128xf32> to vector<6x128xf32>
    %101 = arith.subf %93, %100 : vector<6x128xf32>
    %102 = math.exp %101 : vector<6x128xf32>
    %103 = vector.shape_cast %102 : vector<6x128xf32> to vector<1x6x128xf32>
    %104 = vector.broadcast %103 : vector<1x6x128xf32> to vector<6x6x128xf32>
    %105 = arith.mulf %4, %104 : vector<6x6x128xf32>
    %cst_27 = arith.constant dense<0.000000e+00> : vector<6x128xf32>
    %106 = vector.multi_reduction <add>, %105, %cst_27 [1] : vector<6x6x128xf32> to vector<6x128xf32>
    %107 = vector.broadcast %99 : vector<1x128xf32> to vector<6x128xf32>
    %108 = arith.addf %97, %107 : vector<6x128xf32>
    %109 = math.log %106 : vector<6x128xf32>
    %110 = arith.addf %108, %109 : vector<6x128xf32>
    %c6_i32 = arith.constant 6 : i32
    %111 = arith.index_cast %c6_i32 : i32 to index
    %c0_28 = arith.constant 0 : index
    %c0_29 = arith.constant 0 : index
    %112 = vector.load %arg2[%111, %c0_28, %c0_29] : memref<8x6x128xbf16, #tpu.memory_space<vmem>>, vector<1x6x128xbf16>
    %113 = vector.shape_cast %112 : vector<1x6x128xbf16> to vector<6x128xbf16>
    %114 = arith.extf %113 : vector<6x128xbf16> to vector<6x128xf32>
    %cst_30 = arith.constant dense<0xFF800000> : vector<128xf32>
    %115 = vector.multi_reduction <maximumf>, %110, %cst_30 [0] : vector<6x128xf32> to vector<128xf32>
    %116 = vector.shape_cast %115 : vector<128xf32> to vector<1x128xf32>
    %117 = vector.broadcast %116 : vector<1x128xf32> to vector<6x128xf32>
    %118 = arith.subf %110, %117 : vector<6x128xf32>
    %119 = math.exp %118 : vector<6x128xf32>
    %120 = vector.shape_cast %119 : vector<6x128xf32> to vector<1x6x128xf32>
    %121 = vector.broadcast %120 : vector<1x6x128xf32> to vector<6x6x128xf32>
    %122 = arith.mulf %4, %121 : vector<6x6x128xf32>
    %cst_31 = arith.constant dense<0.000000e+00> : vector<6x128xf32>
    %123 = vector.multi_reduction <add>, %122, %cst_31 [1] : vector<6x6x128xf32> to vector<6x128xf32>
    %124 = vector.broadcast %116 : vector<1x128xf32> to vector<6x128xf32>
    %125 = arith.addf %114, %124 : vector<6x128xf32>
    %126 = math.log %123 : vector<6x128xf32>
    %127 = arith.addf %125, %126 : vector<6x128xf32>
    %c7_i32 = arith.constant 7 : i32
    %128 = arith.index_cast %c7_i32 : i32 to index
    %c0_32 = arith.constant 0 : index
    %c0_33 = arith.constant 0 : index
    %129 = vector.load %arg2[%128, %c0_32, %c0_33] : memref<8x6x128xbf16, #tpu.memory_space<vmem>>, vector<1x6x128xbf16>
    %130 = vector.shape_cast %129 : vector<1x6x128xbf16> to vector<6x128xbf16>
    %131 = arith.extf %130 : vector<6x128xbf16> to vector<6x128xf32>
    %cst_34 = arith.constant dense<0xFF800000> : vector<128xf32>
    %132 = vector.multi_reduction <maximumf>, %127, %cst_34 [0] : vector<6x128xf32> to vector<128xf32>
    %133 = vector.shape_cast %132 : vector<128xf32> to vector<1x128xf32>
    %134 = vector.broadcast %133 : vector<1x128xf32> to vector<6x128xf32>
    %135 = arith.subf %127, %134 : vector<6x128xf32>
    %136 = math.exp %135 : vector<6x128xf32>
    %137 = vector.shape_cast %136 : vector<6x128xf32> to vector<1x6x128xf32>
    %138 = vector.broadcast %137 : vector<1x6x128xf32> to vector<6x6x128xf32>
    %139 = arith.mulf %4, %138 : vector<6x6x128xf32>
    %cst_35 = arith.constant dense<0.000000e+00> : vector<6x128xf32>
    %140 = vector.multi_reduction <add>, %139, %cst_35 [1] : vector<6x6x128xf32> to vector<6x128xf32>
    %141 = vector.broadcast %133 : vector<1x128xf32> to vector<6x128xf32>
    %142 = arith.addf %131, %141 : vector<6x128xf32>
    %143 = math.log %140 : vector<6x128xf32>
    %144 = arith.addf %142, %143 : vector<6x128xf32>
    %c8_i32 = arith.constant 8 : i32
    %c0_36 = arith.constant 0 : index
    %c0_37 = arith.constant 0 : index
    %145 = vector.load %arg6[%c0_36, %c0_37] : memref<6x128xf32, #tpu.memory_space<vmem>>, vector<6x128xf32>
    tpu.vector_store %arg6[%c0_36, %c0_37], %144 {strides = array<i32>} : memref<6x128xf32, #tpu.memory_space<vmem>>, vector<6x128xf32>,
    %c0_i32_38 = arith.constant 0 : i32
    %146 = arith.cmpi eq, %arg1, %c0_i32_38 : i32
    %147 = arith.extui %146 : i1 to i32
    %c0_i32_39 = arith.constant 0 : i32
    %148 = arith.cmpi ne, %147, %c0_i32_39 : i32
    scf.if %148 {
      %c0_40 = arith.constant 0 : index
      %c0_41 = arith.constant 0 : index
      %149 = vector.load %arg6[%c0_40, %c0_41] : memref<6x128xf32, #tpu.memory_space<vmem>>, vector<6x128xf32>
      %c0_42 = arith.constant 0 : index
      %c0_43 = arith.constant 0 : index
      %150 = vector.load %arg4[%c0_42, %c0_43] : memref<6x1xf32, #tpu.memory_space<vmem>>, vector<6x1xf32>
      %151 = vector.broadcast %150 : vector<6x1xf32> to vector<6x128xf32>
      %152 = arith.addf %149, %151 : vector<6x128xf32>
      %cst_44 = arith.constant dense<0xFF800000> : vector<128xf32>
      %153 = vector.multi_reduction <maximumf>, %152, %cst_44 [0] : vector<6x128xf32> to vector<128xf32>
      %154 = vector.shape_cast %153 : vector<128xf32> to vector<1x128xf32>
      %155 = vector.broadcast %154 : vector<1x128xf32> to vector<6x128xf32>
      %156 = arith.subf %152, %155 : vector<6x128xf32>
      %157 = math.exp %156 : vector<6x128xf32>
      %cst_45 = arith.constant dense<0.000000e+00> : vector<128xf32>
      %158 = vector.multi_reduction <add>, %157, %cst_45 [0] : vector<6x128xf32> to vector<128xf32>
      %159 = vector.shape_cast %158 : vector<128xf32> to vector<1x128xf32>
      %160 = math.log %159 : vector<1x128xf32>
      %161 = arith.addf %154, %160 : vector<1x128xf32>
      %c0_46 = arith.constant 0 : index
      %c0_47 = arith.constant 0 : index
      %162 = vector.load %arg5[%c0_46, %c0_47] : memref<1x128xf32, #tpu.memory_space<vmem>>, vector<1x128xf32>
      tpu.vector_store %arg5[%c0_46, %c0_47], %161 {strides = array<i32>} : memref<1x128xf32, #tpu.memory_space<vmem>>, vector<1x128xf32>,
    } else {
    }
    return
  }
  func.func @transform_0(%arg0: i32, %arg1: i32) -> (i32, i32, i32) {
    %c0_i32 = arith.constant 0 : i32
    %c0_i32_0 = arith.constant 0 : i32
    return %arg1, %c0_i32, %arg0 : i32, i32, i32
  }
  func.func @transform_1(%arg0: i32, %arg1: i32) -> (i32, i32) {
    %c0_i32 = arith.constant 0 : i32
    %c0_i32_0 = arith.constant 0 : i32
    %c0_i32_1 = arith.constant 0 : i32
    return %c0_i32, %c0_i32_0 : i32, i32
  }
  func.func @transform_2(%arg0: i32, %arg1: i32) -> (i32, i32) {
    %c0_i32 = arith.constant 0 : i32
    %c0_i32_0 = arith.constant 0 : i32
    %c0_i32_1 = arith.constant 0 : i32
    return %c0_i32, %c0_i32_0 : i32, i32
  }
  func.func @transform_3(%arg0: i32, %arg1: i32) -> (i32, i32) {
    %c0_i32 = arith.constant 0 : i32
    %c0_i32_0 = arith.constant 0 : i32
    return %c0_i32, %arg0 : i32, i32
  }
}

</mosaic_0001>

<bundles_post_ra>
// kernel: tpu_custom_call.1
= control target key start
LH: loop header
LB: loop body
LE: loop exit
PB: predicated region body
PF: predicated region fallthrough
CT: control target
= control target key end

     0   :  { %v19_v0 = vlaneseq  ;;  %s1224_s0 = inlined_call_operand.vmem [shape: bf16[8,6,128], index: 0, kind: input, shape index: {}]   ;;  %s1225_s1 = inlined_call_operand.vmem [shape: f32[6,6], index: 1, kind: input, shape index: {}]   ;;  %s1226_s2 = inlined_call_operand.vmem [shape: f32[6,1], index: 2, kind: input, shape index: {}]   ;;  %s1227_s3 = inlined_call_operand.hbm [shape: f32[1,128], index: 3, kind: output, shape index: {}]  }
   0x1   :  { %v15_v1 = vld [vmem:[%s1225_s1] sm:$0x3f] }
   0x2   :  { %8 = vsyncpa [#allocation4], 0  ;;  %v16_v2 = vmul.f32 1.442695, %v15_v1  ;;  %v20_v3 = vshrl.u32 %v19_v0, 7  ;;  %v978_v4 = vmov -10000.0  }
   0x3   :  { %vm72_vm1 = vcmask 1045504   ;;  %vm150_vm2 = vcmask 1041409   ;;  %vm152_vm3 = vcmask 1042434   ;;  %vm154_vm4 = vcmask 1043459   ;;  %s811_s6 = sshll.u32 %s1227_s3, 4  ;;  %s812_s6 = int_to_ptr.hbm [resolvable:$true] %s811_s6 }
   0x4   :  { %834 = vpow2.f32 %v16_v2  ;;  %831 = vset.pattern.permute.xlu1 %v20_v3  ;;  %vm66_vm0 = vcmp.eq.s32.totalorder %v20_v3, 0  ;;  %830 = vset.pattern.permute.xlu0 %v20_v3  ;;  %vm156_vm5 = vcmask 1044484   ;;  %vm158_vm6 = vcmask 1045509  }
   0x5   :  { %v67_v5 = vsel %vm66_vm0, 0.0, %v978_v4  ;;  %832 = vset.pattern.permute.xlu2 %v20_v3 }
   0x6   :  { %68 = vst [vmem:[#allocation2] sm:$0x3f] %v67_v5 }
   0xa   :  { %v835_v6 = vpop.eup %834 }
   0xb   :  { %v32_v7 = vperm.slane %v835_v6, 2  ;;  %v18_v8 = vperm.slane %v835_v6, 0  ;;  %v46_v9 = vperm.slane %v835_v6, 4  ;;  %v39_v10 = vperm.slane %v835_v6, 3 }
   0xc   :  { %v25_v11 = vperm.slane %v835_v6, 1  ;;  %v53_v12 = vperm.slane %v835_v6, 5 }
   0xd   :  { %37 = vperm.xlu1 %831, %v32_v7   ;;  %23 = vperm.xlu0 %830, %v18_v8   ;;  %v69_v13 = vld [vmem:[#allocation2] sm:$0x3f] }
   0xe   :  { %51 = vperm.xlu2 %832, %v46_v9   ;;  %v73_v14 = vsel %vm72_vm1, %v69_v13, -inf }
   0xf   :  { %v74_v15 = vrot.slane %v73_v14, 4 }
  0x11   :  { %v75_v16 = vmax.f32 %v73_v14, %v74_v15  ;;  %v70_v15 = vld [vmem:[%s1224_s0] sm:$0x7] }
  0x13   :  { %v76_v17 = vrot.slane %v75_v16, 2 }
  0x15   :  { %44 = vperm.xlu1 %831, %v39_v10   ;;  %30 = vperm.xlu0 %830, %v25_v11   ;;  %v77_v18 = vmax.f32 %v75_v16, %v76_v17 }
  0x16   :  { %58 = vperm.xlu2 %832, %v53_v12  }
  0x17   :  { %v78_v19 = vrot.slane %v77_v18, 1 }
  0x19   :  { %v1005_v20 = vmax.f32 %v77_v18, %v78_v19  ;;  %v71_v19 = vunpack.c.l.bf16 %v70_v15 }
  0x1b   :  { %v80_v21 = vsub.f32 %v69_v13, %v1005_v20 }
  0x1d   :  { %v81_v22 = vmul.f32 1.442695, %v80_v21 }
  0x1f   :  { %836 = vpow2.f32 %v81_v22 }
  0x25   :  { %v837_v24 = vpop.eup %836 }
  0x68   :  { %v1008_v23 = vpop.permute.xlu2 %51 }
  0x69   :  { %v87_v26 = vmul.f32 %v837_v24, %v1008_v23 }
  0x6b   :  { %v117_v28 = vsel %vm72_vm1, %v87_v26, 0.0 }
  0x6c   :  { %v118_v34 = vrot.slane %v117_v28, 4 }
  0x6e   :  { %v119_v40 = vadd.f32 %v118_v34, %v117_v28 }
  0x70   :  { %v1010_v25 = vpop.permute.xlu2 %58  ;;  %v120_v50 = vrot.slane %v119_v40, 2 }
  0x71   :  { %v88_v27 = vmul.f32 %v837_v24, %v1010_v25 }
  0x72   :  { %v121_v58 = vadd.f32 %v120_v50, %v119_v40 }
  0x73   :  { %v124_v29 = vsel %vm72_vm1, %v88_v27, 0.0 }
  0x74   :  { %v125_v35 = vrot.slane %v124_v29, 4  ;;  %v122_v2 = vrot.slane %v121_v58, 1 }
  0x76   :  { %v126_v43 = vadd.f32 %v125_v35, %v124_v29  ;;  %v123_v10 = vadd.f32 %v122_v2, %v121_v58 }
  0x78   :  { %v127_v52 = vrot.slane %v126_v43, 2 }
  0x7a   :  { %v128_v62 = vadd.f32 %v127_v52, %v126_v43 }
  0x7c   :  { %v129_v6 = vrot.slane %v128_v62, 1 }
  0x7e   :  { %v130_v13 = vadd.f32 %v129_v6, %v128_v62 }
  0x7f   :  { %v1016_v30 = vpop.permute.xlu1 %37  ;;  %v1018_v31 = vpop.permute.xlu0 %23 }
  0x80   :  { %v85_v32 = vmul.f32 %v837_v24, %v1016_v30  ;;  %v83_v33 = vmul.f32 %v837_v24, %v1018_v31 }
  0x82   :  { %v103_v36 = vsel %vm72_vm1, %v85_v32, 0.0  ;;  %v89_v37 = vsel %vm72_vm1, %v83_v33, 0.0  ;;  %v131_v33 = vadd.f32 %v1005_v20, %v71_v19 }
  0x83   :  { %v104_v38 = vrot.slane %v103_v36, 4  ;;  %v90_v39 = vrot.slane %v89_v37, 4 }
  0x85   :  { %v105_v41 = vadd.f32 %v104_v38, %v103_v36  ;;  %v91_v42 = vadd.f32 %v90_v39, %v89_v37 }
  0x87   :  { %v106_v44 = vrot.slane %v105_v41, 2  ;;  %v92_v45 = vrot.slane %v91_v42, 2  ;;  %v1024_v46 = vpop.permute.xlu1 %44  ;;  %v1026_v47 = vpop.permute.xlu0 %30 }
  0x88   :  { %v86_v48 = vmul.f32 %v837_v24, %v1024_v46  ;;  %v84_v49 = vmul.f32 %v837_v24, %v1026_v47 }
  0x89   :  { %v107_v51 = vadd.f32 %v106_v44, %v105_v41  ;;  %v93_v53 = vadd.f32 %v92_v45, %v91_v42 }
  0x8a   :  { %v110_v54 = vsel %vm72_vm1, %v86_v48, 0.0  ;;  %v96_v55 = vsel %vm72_vm1, %v84_v49, 0.0 }
  0x8b   :  { %v111_v56 = vrot.slane %v110_v54, 4  ;;  %v97_v57 = vrot.slane %v96_v55, 4  ;;  %v108_v59 = vrot.slane %v107_v51, 1  ;;  %v94_v63 = vrot.slane %v93_v53, 1 }
  0x8d   :  { %v112_v60 = vadd.f32 %v111_v56, %v110_v54  ;;  %v98_v61 = vadd.f32 %v97_v57, %v96_v55  ;;  %v109_v3 = vadd.f32 %v108_v59, %v107_v51  ;;  %v95_v7 = vadd.f32 %v94_v63, %v93_v53 }
  0x8f   :  { %v113_v0 = vrot.slane %v112_v60, 2  ;;  %v99_v1 = vrot.slane %v98_v61, 2  ;;  %838 = vlog2.f32 %v109_v3 }
  0x90   :  { %840 = vlog2.f32 %v95_v7 }
  0x91   :  { %v114_v4 = vadd.f32 %v113_v0, %v112_v60  ;;  %v100_v5 = vadd.f32 %v99_v1, %v98_v61 }
  0x93   :  { %v115_v8 = vrot.slane %v114_v4, 1  ;;  %v101_v9 = vrot.slane %v100_v5, 1 }
  0x95   :  { %v116_v11 = vadd.f32 %v115_v8, %v114_v4  ;;  %v102_v12 = vadd.f32 %v101_v9, %v100_v5  ;;  %v839_v14 = vpop.eup %838 }
  0x96   :  { %v841_v16 = vpop.eup %840  ;;  %v137_v27 = vmul.f32 0.6931472, %v839_v14 }
  0x97   :  { %842 = vlog2.f32 %v116_v11  ;;  %v133_v22 = vmul.f32 0.6931472, %v841_v16 }
  0x98   :  { %844 = vlog2.f32 %v102_v12 }
  0x99   :  { %846 = vlog2.f32 %v123_v10 }
  0x9a   :  { %848 = vlog2.f32 %v130_v13 }
  0x9d   :  { %v843_v17 = vpop.eup %842 }
  0x9e   :  { %v845_v18 = vpop.eup %844  ;;  %v139_v28 = vmul.f32 0.6931472, %v843_v17 }
  0x9f   :  { %v847_v21 = vpop.eup %846  ;;  %v135_v24 = vmul.f32 0.6931472, %v845_v18 }
  0xa0   :  { %v849_v26 = vpop.eup %848  ;;  %v141_v32 = vmul.f32 0.6931472, %v847_v21 }
  0xa1   :  { %v151_v29 = vsel %vm150_vm2, %v135_v24, %v133_v22  ;;  %v143_v35 = vmul.f32 0.6931472, %v849_v26 }
  0xa2   :  { %v153_v34 = vsel %vm152_vm3, %v137_v27, %v151_v29 }
  0xa3   :  { %v155_v36 = vsel %vm154_vm4, %v139_v28, %v153_v34 }
  0xa4   :  { %v157_v37 = vsel %vm156_vm5, %v141_v32, %v155_v36 }
  0xa5   :  { %v159_v38 = vsel %vm158_vm6, %v143_v35, %v157_v37 }
  0xa6   :  { %v161_v39 = vadd.f32 %v159_v38, %v131_v33 }
  0xa8   :  { %v165_v40 = vsel %vm72_vm1, %v161_v39, -inf }
  0xa9   :  { %v166_v41 = vrot.slane %v165_v40, 4 }
  0xab   :  { %v167_v42 = vmax.f32 %v165_v40, %v166_v41  ;;  %v820_v41 = vld [vmem:[%s1224_s0 + $0x4] sm:$0x7] }
  0xad   :  { %v168_v43 = vrot.slane %v167_v42, 2 }
  0xaf   :  { %v169_v44 = vmax.f32 %v167_v42, %v168_v43 }
  0xb1   :  { %v170_v45 = vrot.slane %v169_v44, 1 }
  0xb3   :  { %v1042_v48 = vmax.f32 %v169_v44, %v170_v45 }
  0xb5   :  { %v172_v20 = vsub.f32 %v161_v39, %v1042_v48 }
  0xb7   :  { %v173_v49 = vmul.f32 1.442695, %v172_v20 }
  0xb9   :  { %850 = vpow2.f32 %v173_v49  ;;  %v164_v49 = vunpack.c.l.bf16 %v820_v41 }
  0xbf   :  { %v851_v50 = vpop.eup %850 }
  0xc0   :  { %v175_v51 = vmul.f32 %v851_v50, %v1018_v31  ;;  %v176_v52 = vmul.f32 %v851_v50, %v1026_v47  ;;  %v177_v53 = vmul.f32 %v851_v50, %v1016_v30  ;;  %v178_v54 = vmul.f32 %v851_v50, %v1024_v46 }
  0xc1   :  { %v179_v55 = vmul.f32 %v851_v50, %v1008_v23  ;;  %v180_v56 = vmul.f32 %v851_v50, %v1010_v25 }
  0xc2   :  { %v181_v57 = vsel %vm72_vm1, %v175_v51, 0.0  ;;  %v188_v58 = vsel %vm72_vm1, %v176_v52, 0.0  ;;  %v195_v59 = vsel %vm72_vm1, %v177_v53, 0.0  ;;  %v202_v60 = vsel %vm72_vm1, %v178_v54, 0.0 }
  0xc3   :  { %v182_v61 = vrot.slane %v181_v57, 4  ;;  %v189_v62 = vrot.slane %v188_v58, 4  ;;  %v196_v63 = vrot.slane %v195_v59, 4  ;;  %v203_v0 = vrot.slane %v202_v60, 4 }
  0xc4   :  { %v209_v1 = vsel %vm72_vm1, %v179_v55, 0.0  ;;  %v216_v2 = vsel %vm72_vm1, %v180_v56, 0.0 }
  0xc5   :  { %v183_v3 = vadd.f32 %v182_v61, %v181_v57  ;;  %v190_v4 = vadd.f32 %v189_v62, %v188_v58  ;;  %v197_v5 = vadd.f32 %v196_v63, %v195_v59  ;;  %v204_v6 = vadd.f32 %v203_v0, %v202_v60 }
  0xc6   :  { %v210_v7 = vrot.slane %v209_v1, 4  ;;  %v217_v8 = vrot.slane %v216_v2, 4  ;;  %v223_v59 = vadd.f32 %v1042_v48, %v164_v49 }
  0xc7   :  { %v184_v9 = vrot.slane %v183_v3, 2  ;;  %v191_v10 = vrot.slane %v190_v4, 2  ;;  %v198_v11 = vrot.slane %v197_v5, 2  ;;  %v205_v12 = vrot.slane %v204_v6, 2 }
  0xc8   :  { %v211_v13 = vadd.f32 %v210_v7, %v209_v1  ;;  %v218_v14 = vadd.f32 %v217_v8, %v216_v2 }
  0xc9   :  { %v185_v15 = vadd.f32 %v184_v9, %v183_v3  ;;  %v192_v16 = vadd.f32 %v191_v10, %v190_v4  ;;  %v199_v17 = vadd.f32 %v198_v11, %v197_v5  ;;  %v206_v18 = vadd.f32 %v205_v12, %v204_v6 }
  0xca   :  { %v212_v19 = vrot.slane %v211_v13, 2  ;;  %v219_v21 = vrot.slane %v218_v14, 2 }
  0xcb   :  { %v186_v22 = vrot.slane %v185_v15, 1  ;;  %v193_v24 = vrot.slane %v192_v16, 1  ;;  %v200_v26 = vrot.slane %v199_v17, 1  ;;  %v207_v27 = vrot.slane %v206_v18, 1 }
  0xcc   :  { %v213_v28 = vadd.f32 %v212_v19, %v211_v13  ;;  %v220_v29 = vadd.f32 %v219_v21, %v218_v14 }
  0xcd   :  { %v187_v32 = vadd.f32 %v186_v22, %v185_v15  ;;  %v194_v33 = vadd.f32 %v193_v24, %v192_v16  ;;  %v201_v34 = vadd.f32 %v200_v26, %v199_v17  ;;  %v208_v35 = vadd.f32 %v207_v27, %v206_v18 }
  0xce   :  { %v214_v36 = vrot.slane %v213_v28, 1  ;;  %v221_v37 = vrot.slane %v220_v29, 1 }
  0xcf   :  { %852 = vlog2.f32 %v187_v32 }
  0xd0   :  { %v215_v38 = vadd.f32 %v214_v36, %v213_v28  ;;  %v222_v39 = vadd.f32 %v221_v37, %v220_v29  ;;  %854 = vlog2.f32 %v194_v33 }
  0xd1   :  { %856 = vlog2.f32 %v201_v34 }
  0xd2   :  { %858 = vlog2.f32 %v208_v35 }
  0xd3   :  { %860 = vlog2.f32 %v215_v38 }
  0xd4   :  { %862 = vlog2.f32 %v222_v39 }
  0xd5   :  { %v853_v40 = vpop.eup %852 }
  0xd6   :  { %v855_v42 = vpop.eup %854  ;;  %v225_v43 = vmul.f32 0.6931472, %v853_v40 }
  0xd7   :  { %v857_v44 = vpop.eup %856  ;;  %v227_v45 = vmul.f32 0.6931472, %v855_v42 }
  0xd8   :  { %v859_v20 = vpop.eup %858  ;;  %v229_v50 = vmul.f32 0.6931472, %v857_v44 }
  0xd9   :  { %v861_v51 = vpop.eup %860  ;;  %v231_v52 = vmul.f32 0.6931472, %v859_v20  ;;  %v242_v53 = vsel %vm150_vm2, %v227_v45, %v225_v43 }
  0xda   :  { %v863_v54 = vpop.eup %862  ;;  %v233_v55 = vmul.f32 0.6931472, %v861_v51  ;;  %v243_v56 = vsel %vm152_vm3, %v229_v50, %v242_v53 }
  0xdb   :  { %v235_v57 = vmul.f32 0.6931472, %v863_v54  ;;  %v244_v58 = vsel %vm154_vm4, %v231_v52, %v243_v56 }
  0xdc   :  { %v245_v60 = vsel %vm156_vm5, %v233_v55, %v244_v58 }
  0xdd   :  { %v246_v61 = vsel %vm158_vm6, %v235_v57, %v245_v60 }
  0xde   :  { %v248_v62 = vadd.f32 %v246_v61, %v223_v59 }
  0xe0   :  { %v252_v63 = vsel %vm72_vm1, %v248_v62, -inf }
  0xe1   :  { %v253_v0 = vrot.slane %v252_v63, 4 }
  0xe3   :  { %v254_v1 = vmax.f32 %v252_v63, %v253_v0  ;;  %v821_v0 = vld [vmem:[%s1224_s0 + $0x8] sm:$0x7] }
  0xe5   :  { %v255_v2 = vrot.slane %v254_v1, 2 }
  0xe7   :  { %v256_v3 = vmax.f32 %v254_v1, %v255_v2 }
  0xe9   :  { %v257_v4 = vrot.slane %v256_v3, 1 }
  0xeb   :  { %v1067_v5 = vmax.f32 %v256_v3, %v257_v4 }
  0xed   :  { %v259_v6 = vsub.f32 %v248_v62, %v1067_v5 }
  0xef   :  { %v260_v7 = vmul.f32 1.442695, %v259_v6 }
  0xf1   :  { %864 = vpow2.f32 %v260_v7  ;;  %v251_v7 = vunpack.c.l.bf16 %v821_v0 }
  0xf7   :  { %v865_v8 = vpop.eup %864 }
  0xf8   :  { %v262_v48 = vmul.f32 %v865_v8, %v1018_v31  ;;  %v263_v9 = vmul.f32 %v865_v8, %v1026_v47  ;;  %v264_v10 = vmul.f32 %v865_v8, %v1016_v30  ;;  %v265_v11 = vmul.f32 %v865_v8, %v1024_v46 }
  0xf9   :  { %v266_v12 = vmul.f32 %v865_v8, %v1008_v23  ;;  %v267_v13 = vmul.f32 %v865_v8, %v1010_v25 }
  0xfa   :  { %v268_v14 = vsel %vm72_vm1, %v262_v48, 0.0  ;;  %v275_v15 = vsel %vm72_vm1, %v263_v9, 0.0  ;;  %v282_v16 = vsel %vm72_vm1, %v264_v10, 0.0  ;;  %v289_v17 = vsel %vm72_vm1, %v265_v11, 0.0 }
  0xfb   :  { %v269_v18 = vrot.slane %v268_v14, 4  ;;  %v276_v19 = vrot.slane %v275_v15, 4  ;;  %v283_v21 = vrot.slane %v282_v16, 4  ;;  %v290_v22 = vrot.slane %v289_v17, 4 }
  0xfc   :  { %v296_v24 = vsel %vm72_vm1, %v266_v12, 0.0  ;;  %v303_v26 = vsel %vm72_vm1, %v267_v13, 0.0 }
  0xfd   :  { %v270_v27 = vadd.f32 %v269_v18, %v268_v14  ;;  %v277_v28 = vadd.f32 %v276_v19, %v275_v15  ;;  %v284_v29 = vadd.f32 %v283_v21, %v282_v16  ;;  %v291_v32 = vadd.f32 %v290_v22, %v289_v17 }
  0xfe   :  { %v297_v33 = vrot.slane %v296_v24, 4  ;;  %v304_v34 = vrot.slane %v303_v26, 4  ;;  %v310_v16 = vadd.f32 %v1067_v5, %v251_v7 }
  0xff   :  { %v271_v35 = vrot.slane %v270_v27, 2  ;;  %v278_v36 = vrot.slane %v277_v28, 2  ;;  %v285_v37 = vrot.slane %v284_v29, 2  ;;  %v292_v38 = vrot.slane %v291_v32, 2 }
 0x100   :  { %v298_v39 = vadd.f32 %v297_v33, %v296_v24  ;;  %v305_v40 = vadd.f32 %v304_v34, %v303_v26 }
 0x101   :  { %v272_v41 = vadd.f32 %v271_v35, %v270_v27  ;;  %v279_v42 = vadd.f32 %v278_v36, %v277_v28  ;;  %v286_v43 = vadd.f32 %v285_v37, %v284_v29  ;;  %v293_v44 = vadd.f32 %v292_v38, %v291_v32 }
 0x102   :  { %v299_v45 = vrot.slane %v298_v39, 2  ;;  %v306_v20 = vrot.slane %v305_v40, 2 }
 0x103   :  { %v273_v49 = vrot.slane %v272_v41, 1  ;;  %v280_v50 = vrot.slane %v279_v42, 1  ;;  %v287_v51 = vrot.slane %v286_v43, 1  ;;  %v294_v52 = vrot.slane %v293_v44, 1 }
 0x104   :  { %v300_v53 = vadd.f32 %v299_v45, %v298_v39  ;;  %v307_v54 = vadd.f32 %v306_v20, %v305_v40 }
 0x105   :  { %v274_v55 = vadd.f32 %v273_v49, %v272_v41  ;;  %v281_v56 = vadd.f32 %v280_v50, %v279_v42  ;;  %v288_v57 = vadd.f32 %v287_v51, %v286_v43  ;;  %v295_v58 = vadd.f32 %v294_v52, %v293_v44 }
 0x106   :  { %v301_v59 = vrot.slane %v300_v53, 1  ;;  %v308_v60 = vrot.slane %v307_v54, 1 }
 0x107   :  { %866 = vlog2.f32 %v274_v55 }
 0x108   :  { %v302_v61 = vadd.f32 %v301_v59, %v300_v53  ;;  %v309_v62 = vadd.f32 %v308_v60, %v307_v54  ;;  %868 = vlog2.f32 %v281_v56 }
 0x109   :  { %870 = vlog2.f32 %v288_v57 }
 0x10a   :  { %872 = vlog2.f32 %v295_v58 }
 0x10b   :  { %874 = vlog2.f32 %v302_v61 }
 0x10c   :  { %876 = vlog2.f32 %v309_v62 }
 0x10d   :  { %v867_v63 = vpop.eup %866 }
 0x10e   :  { %v869_v1 = vpop.eup %868  ;;  %v312_v2 = vmul.f32 0.6931472, %v867_v63 }
 0x10f   :  { %v871_v3 = vpop.eup %870  ;;  %v314_v4 = vmul.f32 0.6931472, %v869_v1 }
 0x110   :  { %v873_v6 = vpop.eup %872  ;;  %v316_v8 = vmul.f32 0.6931472, %v871_v3 }
 0x111   :  { %v875_v48 = vpop.eup %874  ;;  %v318_v9 = vmul.f32 0.6931472, %v873_v6  ;;  %v329_v10 = vsel %vm150_vm2, %v314_v4, %v312_v2 }
 0x112   :  { %v877_v11 = vpop.eup %876  ;;  %v320_v12 = vmul.f32 0.6931472, %v875_v48  ;;  %v330_v13 = vsel %vm152_vm3, %v316_v8, %v329_v10 }
 0x113   :  { %v322_v14 = vmul.f32 0.6931472, %v877_v11  ;;  %v331_v15 = vsel %vm154_vm4, %v318_v9, %v330_v13 }
 0x114   :  { %v332_v17 = vsel %vm156_vm5, %v320_v12, %v331_v15 }
 0x115   :  { %v333_v18 = vsel %vm158_vm6, %v322_v14, %v332_v17 }
 0x116   :  { %v335_v19 = vadd.f32 %v333_v18, %v310_v16 }
 0x118   :  { %v339_v21 = vsel %vm72_vm1, %v335_v19, -inf }
 0x119   :  { %v340_v22 = vrot.slane %v339_v21, 4 }
 0x11b   :  { %v341_v24 = vmax.f32 %v339_v21, %v340_v22  ;;  %v822_v22 = vld [vmem:[%s1224_s0 + $0xc] sm:$0x7] }
 0x11d   :  { %v342_v26 = vrot.slane %v341_v24, 2 }
 0x11f   :  { %v343_v27 = vmax.f32 %v341_v24, %v342_v26 }
 0x121   :  { %v344_v28 = vrot.slane %v343_v27, 1 }
 0x123   :  { %v1092_v29 = vmax.f32 %v343_v27, %v344_v28 }
 0x125   :  { %v346_v32 = vsub.f32 %v335_v19, %v1092_v29 }
 0x127   :  { %v347_v33 = vmul.f32 1.442695, %v346_v32 }
 0x129   :  { %878 = vpow2.f32 %v347_v33  ;;  %v338_v33 = vunpack.c.l.bf16 %v822_v22 }
 0x12f   :  { %v879_v34 = vpop.eup %878 }
 0x130   :  { %v349_v5 = vmul.f32 %v879_v34, %v1018_v31  ;;  %v350_v35 = vmul.f32 %v879_v34, %v1026_v47  ;;  %v351_v36 = vmul.f32 %v879_v34, %v1016_v30  ;;  %v352_v37 = vmul.f32 %v879_v34, %v1024_v46 }
 0x131   :  { %v353_v38 = vmul.f32 %v879_v34, %v1008_v23  ;;  %v354_v39 = vmul.f32 %v879_v34, %v1010_v25 }
 0x132   :  { %v355_v40 = vsel %vm72_vm1, %v349_v5, 0.0  ;;  %v362_v41 = vsel %vm72_vm1, %v350_v35, 0.0  ;;  %v369_v42 = vsel %vm72_vm1, %v351_v36, 0.0  ;;  %v376_v43 = vsel %vm72_vm1, %v352_v37, 0.0 }
 0x133   :  { %v356_v44 = vrot.slane %v355_v40, 4  ;;  %v363_v45 = vrot.slane %v362_v41, 4  ;;  %v370_v20 = vrot.slane %v369_v42, 4  ;;  %v377_v49 = vrot.slane %v376_v43, 4 }
 0x134   :  { %v383_v50 = vsel %vm72_vm1, %v353_v38, 0.0  ;;  %v390_v51 = vsel %vm72_vm1, %v354_v39, 0.0 }
 0x135   :  { %v357_v52 = vadd.f32 %v356_v44, %v355_v40  ;;  %v364_v53 = vadd.f32 %v363_v45, %v362_v41  ;;  %v371_v54 = vadd.f32 %v370_v20, %v369_v42  ;;  %v378_v55 = vadd.f32 %v377_v49, %v376_v43 }
 0x136   :  { %v384_v56 = vrot.slane %v383_v50, 4  ;;  %v391_v57 = vrot.slane %v390_v51, 4  ;;  %v397_v42 = vadd.f32 %v1092_v29, %v338_v33 }
 0x137   :  { %v358_v58 = vrot.slane %v357_v52, 2  ;;  %v365_v59 = vrot.slane %v364_v53, 2  ;;  %v372_v60 = vrot.slane %v371_v54, 2  ;;  %v379_v61 = vrot.slane %v378_v55, 2 }
 0x138   :  { %v385_v62 = vadd.f32 %v384_v56, %v383_v50  ;;  %v392_v63 = vadd.f32 %v391_v57, %v390_v51 }
 0x139   :  { %v359_v0 = vadd.f32 %v358_v58, %v357_v52  ;;  %v366_v1 = vadd.f32 %v365_v59, %v364_v53  ;;  %v373_v2 = vadd.f32 %v372_v60, %v371_v54  ;;  %v380_v3 = vadd.f32 %v379_v61, %v378_v55 }
 0x13a   :  { %v386_v4 = vrot.slane %v385_v62, 2  ;;  %v393_v6 = vrot.slane %v392_v63, 2 }
 0x13b   :  { %v360_v7 = vrot.slane %v359_v0, 1  ;;  %v367_v8 = vrot.slane %v366_v1, 1  ;;  %v374_v48 = vrot.slane %v373_v2, 1  ;;  %v381_v9 = vrot.slane %v380_v3, 1 }
 0x13c   :  { %v387_v10 = vadd.f32 %v386_v4, %v385_v62  ;;  %v394_v11 = vadd.f32 %v393_v6, %v392_v63 }
 0x13d   :  { %v361_v12 = vadd.f32 %v360_v7, %v359_v0  ;;  %v368_v13 = vadd.f32 %v367_v8, %v366_v1  ;;  %v375_v14 = vadd.f32 %v374_v48, %v373_v2  ;;  %v382_v15 = vadd.f32 %v381_v9, %v380_v3 }
 0x13e   :  { %v388_v16 = vrot.slane %v387_v10, 1  ;;  %v395_v17 = vrot.slane %v394_v11, 1 }
 0x13f   :  { %880 = vlog2.f32 %v361_v12 }
 0x140   :  { %v389_v18 = vadd.f32 %v388_v16, %v387_v10  ;;  %v396_v19 = vadd.f32 %v395_v17, %v394_v11  ;;  %882 = vlog2.f32 %v368_v13 }
 0x141   :  { %884 = vlog2.f32 %v375_v14 }
 0x142   :  { %886 = vlog2.f32 %v382_v15 }
 0x143   :  { %888 = vlog2.f32 %v389_v18 }
 0x144   :  { %890 = vlog2.f32 %v396_v19 }
 0x145   :  { %v881_v21 = vpop.eup %880 }
 0x146   :  { %v883_v24 = vpop.eup %882  ;;  %v399_v26 = vmul.f32 0.6931472, %v881_v21 }
 0x147   :  { %v885_v27 = vpop.eup %884  ;;  %v401_v28 = vmul.f32 0.6931472, %v883_v24 }
 0x148   :  { %v887_v32 = vpop.eup %886  ;;  %v403_v34 = vmul.f32 0.6931472, %v885_v27 }
 0x149   :  { %v889_v5 = vpop.eup %888  ;;  %v405_v35 = vmul.f32 0.6931472, %v887_v32  ;;  %v416_v36 = vsel %vm150_vm2, %v401_v28, %v399_v26 }
 0x14a   :  { %v891_v37 = vpop.eup %890  ;;  %v407_v38 = vmul.f32 0.6931472, %v889_v5  ;;  %v417_v39 = vsel %vm152_vm3, %v403_v34, %v416_v36 }
 0x14b   :  { %v409_v40 = vmul.f32 0.6931472, %v891_v37  ;;  %v418_v41 = vsel %vm154_vm4, %v405_v35, %v417_v39 }
 0x14c   :  { %v419_v43 = vsel %vm156_vm5, %v407_v38, %v418_v41 }
 0x14d   :  { %v420_v44 = vsel %vm158_vm6, %v409_v40, %v419_v43 }
 0x14e   :  { %v422_v45 = vadd.f32 %v420_v44, %v397_v42 }
 0x150   :  { %v426_v20 = vsel %vm72_vm1, %v422_v45, -inf }
 0x151   :  { %v427_v49 = vrot.slane %v426_v20, 4 }
 0x153   :  { %v428_v50 = vmax.f32 %v426_v20, %v427_v49  ;;  %v823_v49 = vld [vmem:[%s1224_s0 + $0x10] sm:$0x7] }
 0x155   :  { %v429_v51 = vrot.slane %v428_v50, 2 }
 0x157   :  { %v430_v52 = vmax.f32 %v428_v50, %v429_v51 }
 0x159   :  { %v431_v53 = vrot.slane %v430_v52, 1 }
 0x15b   :  { %v1117_v54 = vmax.f32 %v430_v52, %v431_v53 }
 0x15d   :  { %v433_v55 = vsub.f32 %v422_v45, %v1117_v54 }
 0x15f   :  { %v434_v56 = vmul.f32 1.442695, %v433_v55 }
 0x161   :  { %892 = vpow2.f32 %v434_v56  ;;  %v425_v56 = vunpack.c.l.bf16 %v823_v49 }
 0x167   :  { %v893_v57 = vpop.eup %892 }
 0x168   :  { %v436_v29 = vmul.f32 %v893_v57, %v1018_v31  ;;  %v437_v58 = vmul.f32 %v893_v57, %v1026_v47  ;;  %v438_v59 = vmul.f32 %v893_v57, %v1016_v30  ;;  %v439_v60 = vmul.f32 %v893_v57, %v1024_v46 }
 0x169   :  { %v440_v61 = vmul.f32 %v893_v57, %v1008_v23  ;;  %v441_v62 = vmul.f32 %v893_v57, %v1010_v25 }
 0x16a   :  { %v442_v63 = vsel %vm72_vm1, %v436_v29, 0.0  ;;  %v449_v0 = vsel %vm72_vm1, %v437_v58, 0.0  ;;  %v456_v1 = vsel %vm72_vm1, %v438_v59, 0.0  ;;  %v463_v2 = vsel %vm72_vm1, %v439_v60, 0.0 }
 0x16b   :  { %v443_v3 = vrot.slane %v442_v63, 4  ;;  %v450_v4 = vrot.slane %v449_v0, 4  ;;  %v457_v6 = vrot.slane %v456_v1, 4  ;;  %v464_v7 = vrot.slane %v463_v2, 4 }
 0x16c   :  { %v470_v8 = vsel %vm72_vm1, %v440_v61, 0.0  ;;  %v477_v48 = vsel %vm72_vm1, %v441_v62, 0.0 }
 0x16d   :  { %v444_v9 = vadd.f32 %v443_v3, %v442_v63  ;;  %v451_v10 = vadd.f32 %v450_v4, %v449_v0  ;;  %v458_v11 = vadd.f32 %v457_v6, %v456_v1  ;;  %v465_v12 = vadd.f32 %v464_v7, %v463_v2 }
 0x16e   :  { %v471_v13 = vrot.slane %v470_v8, 4  ;;  %v478_v14 = vrot.slane %v477_v48, 4  ;;  %v484_v1 = vadd.f32 %v1117_v54, %v425_v56 }
 0x16f   :  { %v445_v15 = vrot.slane %v444_v9, 2  ;;  %v452_v16 = vrot.slane %v451_v10, 2  ;;  %v459_v17 = vrot.slane %v458_v11, 2  ;;  %v466_v18 = vrot.slane %v465_v12, 2 }
 0x170   :  { %v472_v19 = vadd.f32 %v471_v13, %v470_v8  ;;  %v479_v21 = vadd.f32 %v478_v14, %v477_v48 }
 0x171   :  { %v446_v22 = vadd.f32 %v445_v15, %v444_v9  ;;  %v453_v24 = vadd.f32 %v452_v16, %v451_v10  ;;  %v460_v26 = vadd.f32 %v459_v17, %v458_v11  ;;  %v467_v27 = vadd.f32 %v466_v18, %v465_v12 }
 0x172   :  { %v473_v28 = vrot.slane %v472_v19, 2  ;;  %v480_v32 = vrot.slane %v479_v21, 2 }
 0x173   :  { %v447_v33 = vrot.slane %v446_v22, 1  ;;  %v454_v34 = vrot.slane %v453_v24, 1  ;;  %v461_v5 = vrot.slane %v460_v26, 1  ;;  %v468_v35 = vrot.slane %v467_v27, 1 }
 0x174   :  { %v474_v36 = vadd.f32 %v473_v28, %v472_v19  ;;  %v481_v37 = vadd.f32 %v480_v32, %v479_v21 }
 0x175   :  { %v448_v38 = vadd.f32 %v447_v33, %v446_v22  ;;  %v455_v39 = vadd.f32 %v454_v34, %v453_v24  ;;  %v462_v40 = vadd.f32 %v461_v5, %v460_v26  ;;  %v469_v41 = vadd.f32 %v468_v35, %v467_v27 }
 0x176   :  { %v475_v42 = vrot.slane %v474_v36, 1  ;;  %v482_v43 = vrot.slane %v481_v37, 1 }
 0x177   :  { %894 = vlog2.f32 %v448_v38 }
 0x178   :  { %v476_v44 = vadd.f32 %v475_v42, %v474_v36  ;;  %v483_v45 = vadd.f32 %v482_v43, %v481_v37  ;;  %896 = vlog2.f32 %v455_v39 }
 0x179   :  { %898 = vlog2.f32 %v462_v40 }
 0x17a   :  { %900 = vlog2.f32 %v469_v41 }
 0x17b   :  { %902 = vlog2.f32 %v476_v44 }
 0x17c   :  { %904 = vlog2.f32 %v483_v45  ;;  %v979_v45 = vmov 0  }
 0x17d   :  { %v895_v20 = vpop.eup %894  ;;  %833 = vset.pattern.permute.xlu0 %v979_v45 }
 0x17e   :  { %v897_v50 = vpop.eup %896  ;;  %v486_v51 = vmul.f32 0.6931472, %v895_v20  ;;  %v776_v20 = vld [vmem:[%s1226_s2] sm:$0x3f] }
 0x17f   :  { %v899_v52 = vpop.eup %898  ;;  %v488_v53 = vmul.f32 0.6931472, %v897_v50  ;;  %779 = vperm.xlu0 %833, %v776_v20  }
 0x180   :  { %v901_v55 = vpop.eup %900  ;;  %v490_v57 = vmul.f32 0.6931472, %v899_v52 }
 0x181   :  { %v903_v29 = vpop.eup %902  ;;  %v492_v58 = vmul.f32 0.6931472, %v901_v55  ;;  %v503_v59 = vsel %vm150_vm2, %v488_v53, %v486_v51 }
 0x182   :  { %v905_v60 = vpop.eup %904  ;;  %v494_v61 = vmul.f32 0.6931472, %v903_v29  ;;  %v504_v62 = vsel %vm152_vm3, %v490_v57, %v503_v59 }
 0x183   :  { %v496_v63 = vmul.f32 0.6931472, %v905_v60  ;;  %v505_v0 = vsel %vm154_vm4, %v492_v58, %v504_v62 }
 0x184   :  { %v506_v2 = vsel %vm156_vm5, %v494_v61, %v505_v0 }
 0x185   :  { %v507_v3 = vsel %vm158_vm6, %v496_v63, %v506_v2 }
 0x186   :  { %v509_v4 = vadd.f32 %v507_v3, %v484_v1 }
 0x188   :  { %v513_v6 = vsel %vm72_vm1, %v509_v4, -inf }
 0x189   :  { %v514_v7 = vrot.slane %v513_v6, 4 }
 0x18b   :  { %v515_v8 = vmax.f32 %v513_v6, %v514_v7 }
 0x18d   :  { %v516_v48 = vrot.slane %v515_v8, 2 }
 0x18f   :  { %v517_v9 = vmax.f32 %v515_v8, %v516_v48  ;;  %v824_v48 = vld [vmem:[%s1224_s0 + $0x14] sm:$0x7] }
 0x191   :  { %v518_v10 = vrot.slane %v517_v9, 1 }
 0x193   :  { %v1142_v11 = vmax.f32 %v517_v9, %v518_v10 }
 0x195   :  { %v520_v12 = vsub.f32 %v509_v4, %v1142_v11 }
 0x197   :  { %v521_v13 = vmul.f32 1.442695, %v520_v12 }
 0x199   :  { %906 = vpow2.f32 %v521_v13 }
 0x19f   :  { %v907_v14 = vpop.eup %906 }
 0x1a0   :  { %v523_v54 = vmul.f32 %v907_v14, %v1018_v31  ;;  %v524_v15 = vmul.f32 %v907_v14, %v1026_v47  ;;  %v525_v16 = vmul.f32 %v907_v14, %v1016_v30  ;;  %v526_v17 = vmul.f32 %v907_v14, %v1024_v46 }
 0x1a1   :  { %v527_v18 = vmul.f32 %v907_v14, %v1008_v23  ;;  %v528_v19 = vmul.f32 %v907_v14, %v1010_v25 }
 0x1a2   :  { %v529_v21 = vsel %vm72_vm1, %v523_v54, 0.0  ;;  %v536_v22 = vsel %vm72_vm1, %v524_v15, 0.0  ;;  %v543_v24 = vsel %vm72_vm1, %v525_v16, 0.0  ;;  %v550_v26 = vsel %vm72_vm1, %v526_v17, 0.0 }
 0x1a3   :  { %v530_v27 = vrot.slane %v529_v21, 4  ;;  %v537_v28 = vrot.slane %v536_v22, 4  ;;  %v544_v32 = vrot.slane %v543_v24, 4  ;;  %v551_v33 = vrot.slane %v550_v26, 4 }
 0x1a4   :  { %v557_v34 = vsel %vm72_vm1, %v527_v18, 0.0  ;;  %v564_v5 = vsel %vm72_vm1, %v528_v19, 0.0  ;;  %v512_v54 = vunpack.c.l.bf16 %v824_v48 }
 0x1a5   :  { %v531_v35 = vadd.f32 %v530_v27, %v529_v21  ;;  %v538_v36 = vadd.f32 %v537_v28, %v536_v22  ;;  %v545_v37 = vadd.f32 %v544_v32, %v543_v24  ;;  %v552_v38 = vadd.f32 %v551_v33, %v550_v26 }
 0x1a6   :  { %v558_v39 = vrot.slane %v557_v34, 4  ;;  %v565_v40 = vrot.slane %v564_v5, 4  ;;  %v571_v27 = vadd.f32 %v1142_v11, %v512_v54 }
 0x1a7   :  { %v532_v41 = vrot.slane %v531_v35, 2  ;;  %v539_v42 = vrot.slane %v538_v36, 2  ;;  %v546_v43 = vrot.slane %v545_v37, 2  ;;  %v553_v44 = vrot.slane %v552_v38, 2 }
 0x1a8   :  { %v559_v49 = vadd.f32 %v558_v39, %v557_v34  ;;  %v566_v50 = vadd.f32 %v565_v40, %v564_v5 }
 0x1a9   :  { %v533_v51 = vadd.f32 %v532_v41, %v531_v35  ;;  %v540_v52 = vadd.f32 %v539_v42, %v538_v36  ;;  %v547_v53 = vadd.f32 %v546_v43, %v545_v37  ;;  %v554_v55 = vadd.f32 %v553_v44, %v552_v38 }
 0x1aa   :  { %v560_v56 = vrot.slane %v559_v49, 2  ;;  %v567_v57 = vrot.slane %v566_v50, 2 }
 0x1ab   :  { %v534_v29 = vrot.slane %v533_v51, 1  ;;  %v541_v58 = vrot.slane %v540_v52, 1  ;;  %v548_v59 = vrot.slane %v547_v53, 1  ;;  %v555_v60 = vrot.slane %v554_v55, 1 }
 0x1ac   :  { %v561_v61 = vadd.f32 %v560_v56, %v559_v49  ;;  %v568_v62 = vadd.f32 %v567_v57, %v566_v50 }
 0x1ad   :  { %v535_v63 = vadd.f32 %v534_v29, %v533_v51  ;;  %v542_v0 = vadd.f32 %v541_v58, %v540_v52  ;;  %v549_v1 = vadd.f32 %v548_v59, %v547_v53  ;;  %v556_v2 = vadd.f32 %v555_v60, %v554_v55 }
 0x1ae   :  { %v562_v3 = vrot.slane %v561_v61, 1  ;;  %v569_v4 = vrot.slane %v568_v62, 1 }
 0x1af   :  { %908 = vlog2.f32 %v535_v63 }
 0x1b0   :  { %v563_v6 = vadd.f32 %v562_v3, %v561_v61  ;;  %v570_v7 = vadd.f32 %v569_v4, %v568_v62  ;;  %910 = vlog2.f32 %v542_v0 }
 0x1b1   :  { %912 = vlog2.f32 %v549_v1 }
 0x1b2   :  { %914 = vlog2.f32 %v556_v2 }
 0x1b3   :  { %916 = vlog2.f32 %v563_v6 }
 0x1b4   :  { %918 = vlog2.f32 %v570_v7 }
 0x1b5   :  { %v909_v8 = vpop.eup %908 }
 0x1b6   :  { %v911_v9 = vpop.eup %910  ;;  %v573_v10 = vmul.f32 0.6931472, %v909_v8 }
 0x1b7   :  { %v913_v12 = vpop.eup %912  ;;  %v575_v13 = vmul.f32 0.6931472, %v911_v9 }
 0x1b8   :  { %v915_v14 = vpop.eup %914  ;;  %v577_v15 = vmul.f32 0.6931472, %v913_v12 }
 0x1b9   :  { %v917_v16 = vpop.eup %916  ;;  %v579_v17 = vmul.f32 0.6931472, %v915_v14  ;;  %v590_v18 = vsel %vm150_vm2, %v575_v13, %v573_v10 }
 0x1ba   :  { %v919_v19 = vpop.eup %918  ;;  %v581_v21 = vmul.f32 0.6931472, %v917_v16  ;;  %v591_v22 = vsel %vm152_vm3, %v577_v15, %v590_v18 }
 0x1bb   :  { %v583_v24 = vmul.f32 0.6931472, %v919_v19  ;;  %v592_v26 = vsel %vm154_vm4, %v579_v17, %v591_v22 }
 0x1bc   :  { %v593_v28 = vsel %vm156_vm5, %v581_v21, %v592_v26 }
 0x1bd   :  { %v594_v32 = vsel %vm158_vm6, %v583_v24, %v593_v28 }
 0x1be   :  { %v596_v33 = vadd.f32 %v594_v32, %v571_v27 }
 0x1c0   :  { %v600_v34 = vsel %vm72_vm1, %v596_v33, -inf }
 0x1c1   :  { %v601_v5 = vrot.slane %v600_v34, 4 }
 0x1c3   :  { %v602_v35 = vmax.f32 %v600_v34, %v601_v5  ;;  %v825_v5 = vld [vmem:[%s1224_s0 + $0x18] sm:$0x7] }
 0x1c5   :  { %v603_v36 = vrot.slane %v602_v35, 2 }
 0x1c7   :  { %v604_v37 = vmax.f32 %v602_v35, %v603_v36 }
 0x1c9   :  { %v605_v38 = vrot.slane %v604_v37, 1 }
 0x1cb   :  { %v1170_v39 = vmax.f32 %v604_v37, %v605_v38 }
 0x1cd   :  { %v607_v40 = vsub.f32 %v596_v33, %v1170_v39 }
 0x1cf   :  { %v608_v41 = vmul.f32 1.442695, %v607_v40 }
 0x1d1   :  { %920 = vpow2.f32 %v608_v41  ;;  %v599_v41 = vunpack.c.l.bf16 %v825_v5 }
 0x1d7   :  { %v921_v42 = vpop.eup %920 }
 0x1d8   :  { %v610_v11 = vmul.f32 %v921_v42, %v1018_v31  ;;  %v611_v43 = vmul.f32 %v921_v42, %v1026_v47  ;;  %v612_v44 = vmul.f32 %v921_v42, %v1016_v30  ;;  %v613_v45 = vmul.f32 %v921_v42, %v1024_v46 }
 0x1d9   :  { %v614_v20 = vmul.f32 %v921_v42, %v1008_v23  ;;  %v615_v49 = vmul.f32 %v921_v42, %v1010_v25 }
 0x1da   :  { %v616_v50 = vsel %vm72_vm1, %v610_v11, 0.0  ;;  %v623_v51 = vsel %vm72_vm1, %v611_v43, 0.0  ;;  %v630_v52 = vsel %vm72_vm1, %v612_v44, 0.0  ;;  %v637_v53 = vsel %vm72_vm1, %v613_v45, 0.0 }
 0x1db   :  { %v617_v55 = vrot.slane %v616_v50, 4  ;;  %v624_v56 = vrot.slane %v623_v51, 4  ;;  %v631_v57 = vrot.slane %v630_v52, 4  ;;  %v638_v29 = vrot.slane %v637_v53, 4 }
 0x1dc   :  { %v644_v58 = vsel %vm72_vm1, %v614_v20, 0.0  ;;  %v651_v59 = vsel %vm72_vm1, %v615_v49, 0.0 }
 0x1dd   :  { %v618_v60 = vadd.f32 %v617_v55, %v616_v50  ;;  %v625_v61 = vadd.f32 %v624_v56, %v623_v51  ;;  %v632_v62 = vadd.f32 %v631_v57, %v630_v52  ;;  %v639_v63 = vadd.f32 %v638_v29, %v637_v53 }
 0x1de   :  { %v645_v0 = vrot.slane %v644_v58, 4  ;;  %v652_v1 = vrot.slane %v651_v59, 4  ;;  %v658_v52 = vadd.f32 %v1170_v39, %v599_v41 }
 0x1df   :  { %v619_v2 = vrot.slane %v618_v60, 2  ;;  %v626_v3 = vrot.slane %v625_v61, 2  ;;  %v633_v4 = vrot.slane %v632_v62, 2  ;;  %v640_v6 = vrot.slane %v639_v63, 2 }
 0x1e0   :  { %v646_v7 = vadd.f32 %v645_v0, %v644_v58  ;;  %v653_v8 = vadd.f32 %v652_v1, %v651_v59 }
 0x1e1   :  { %v620_v48 = vadd.f32 %v619_v2, %v618_v60  ;;  %v627_v9 = vadd.f32 %v626_v3, %v625_v61  ;;  %v634_v10 = vadd.f32 %v633_v4, %v632_v62  ;;  %v641_v12 = vadd.f32 %v640_v6, %v639_v63 }
 0x1e2   :  { %v647_v13 = vrot.slane %v646_v7, 2  ;;  %v654_v14 = vrot.slane %v653_v8, 2 }
 0x1e3   :  { %v621_v54 = vrot.slane %v620_v48, 1  ;;  %v628_v15 = vrot.slane %v627_v9, 1  ;;  %v635_v16 = vrot.slane %v634_v10, 1  ;;  %v642_v17 = vrot.slane %v641_v12, 1 }
 0x1e4   :  { %v648_v18 = vadd.f32 %v647_v13, %v646_v7  ;;  %v655_v19 = vadd.f32 %v654_v14, %v653_v8 }
 0x1e5   :  { %v622_v21 = vadd.f32 %v621_v54, %v620_v48  ;;  %v629_v22 = vadd.f32 %v628_v15, %v627_v9  ;;  %v636_v24 = vadd.f32 %v635_v16, %v634_v10  ;;  %v643_v26 = vadd.f32 %v642_v17, %v641_v12 }
 0x1e6   :  { %v649_v27 = vrot.slane %v648_v18, 1  ;;  %v656_v28 = vrot.slane %v655_v19, 1 }
 0x1e7   :  { %922 = vlog2.f32 %v622_v21 }
 0x1e8   :  { %v650_v32 = vadd.f32 %v649_v27, %v648_v18  ;;  %v657_v33 = vadd.f32 %v656_v28, %v655_v19  ;;  %924 = vlog2.f32 %v629_v22 }
 0x1e9   :  { %926 = vlog2.f32 %v636_v24 }
 0x1ea   :  { %928 = vlog2.f32 %v643_v26 }
 0x1eb   :  { %930 = vlog2.f32 %v650_v32 }
 0x1ec   :  { %932 = vlog2.f32 %v657_v33 }
 0x1ed   :  { %v923_v34 = vpop.eup %922 }
 0x1ee   :  { %v925_v35 = vpop.eup %924  ;;  %v660_v36 = vmul.f32 0.6931472, %v923_v34 }
 0x1ef   :  { %v927_v37 = vpop.eup %926  ;;  %v662_v38 = vmul.f32 0.6931472, %v925_v35 }
 0x1f0   :  { %v929_v40 = vpop.eup %928  ;;  %v664_v42 = vmul.f32 0.6931472, %v927_v37 }
 0x1f1   :  { %v931_v11 = vpop.eup %930  ;;  %v666_v43 = vmul.f32 0.6931472, %v929_v40  ;;  %v677_v44 = vsel %vm150_vm2, %v662_v38, %v660_v36 }
 0x1f2   :  { %v933_v45 = vpop.eup %932  ;;  %v668_v20 = vmul.f32 0.6931472, %v931_v11  ;;  %v678_v49 = vsel %vm152_vm3, %v664_v42, %v677_v44 }
 0x1f3   :  { %v670_v50 = vmul.f32 0.6931472, %v933_v45  ;;  %v679_v51 = vsel %vm154_vm4, %v666_v43, %v678_v49 }
 0x1f4   :  { %v680_v53 = vsel %vm156_vm5, %v668_v20, %v679_v51  ;;  %v826_v51 = vld [vmem:[%s1224_s0 + $0x1c] sm:$0x7]  ;;  %s980_s0 = smov [#allocation3]  }
 0x1f5   :  { %v681_v55 = vsel %vm158_vm6, %v670_v50, %v680_v53  ;;  %s809_s30 = sshll.u32 %s980_s0, 4  ;;  %s810_s30 = int_to_ptr.vmem [resolvable:$true] %s809_s30 }
 0x1f6   :  { %v683_v56 = vadd.f32 %v681_v55, %v658_v52 }
 0x1f8   :  { %v687_v57 = vsel %vm72_vm1, %v683_v56, -inf }
 0x1f9   :  { %v688_v29 = vrot.slane %v687_v57, 4 }
 0x1fb   :  { %v689_v58 = vmax.f32 %v687_v57, %v688_v29 }
 0x1fd   :  { %v690_v59 = vrot.slane %v689_v58, 2 }
 0x1ff   :  { %v691_v60 = vmax.f32 %v689_v58, %v690_v59  ;;  %v686_v58 = vunpack.c.l.bf16 %v826_v51 }
 0x201   :  { %v692_v61 = vrot.slane %v691_v60, 1 }
 0x203   :  { %v1195_v62 = vmax.f32 %v691_v60, %v692_v61 }
 0x205   :  { %v694_v63 = vsub.f32 %v683_v56, %v1195_v62 }
 0x207   :  { %v695_v0 = vmul.f32 1.442695, %v694_v63 }
 0x209   :  { %934 = vpow2.f32 %v695_v0 }
 0x20f   :  { %v935_v1 = vpop.eup %934 }
 0x210   :  { %v697_v39 = vmul.f32 %v935_v1, %v1018_v31  ;;  %v698_v2 = vmul.f32 %v935_v1, %v1026_v47  ;;  %v699_v3 = vmul.f32 %v935_v1, %v1016_v30  ;;  %v700_v4 = vmul.f32 %v935_v1, %v1024_v46 }
 0x211   :  { %v701_v6 = vmul.f32 %v935_v1, %v1008_v23  ;;  %v702_v7 = vmul.f32 %v935_v1, %v1010_v25 }
 0x212   :  { %v703_v8 = vsel %vm72_vm1, %v697_v39, 0.0  ;;  %v710_v48 = vsel %vm72_vm1, %v698_v2, 0.0  ;;  %v717_v9 = vsel %vm72_vm1, %v699_v3, 0.0  ;;  %v724_v10 = vsel %vm72_vm1, %v700_v4, 0.0 }
 0x213   :  { %v704_v12 = vrot.slane %v703_v8, 4  ;;  %v711_v31 = vrot.slane %v710_v48, 4  ;;  %v718_v13 = vrot.slane %v717_v9, 4  ;;  %v725_v47 = vrot.slane %v724_v10, 4 }
 0x214   :  { %v731_v30 = vsel %vm72_vm1, %v701_v6, 0.0  ;;  %v738_v46 = vsel %vm72_vm1, %v702_v7, 0.0  ;;  %v745_v4 = vadd.f32 %v1195_v62, %v686_v58 }
 0x215   :  { %v705_v14 = vadd.f32 %v704_v12, %v703_v8  ;;  %v712_v23 = vadd.f32 %v711_v31, %v710_v48  ;;  %v719_v54 = vadd.f32 %v718_v13, %v717_v9  ;;  %v726_v25 = vadd.f32 %v725_v47, %v724_v10  ;;  %v780_v8 = vpop.permute.xlu0 %779 }
 0x216   :  { %v732_v15 = vrot.slane %v731_v30, 4  ;;  %v739_v16 = vrot.slane %v738_v46, 4 }
 0x217   :  { %v706_v17 = vrot.slane %v705_v14, 2  ;;  %v713_v18 = vrot.slane %v712_v23, 2  ;;  %v720_v19 = vrot.slane %v719_v54, 2  ;;  %v727_v21 = vrot.slane %v726_v25, 2 }
 0x218   :  { %v733_v22 = vadd.f32 %v732_v15, %v731_v30  ;;  %v740_v24 = vadd.f32 %v739_v16, %v738_v46 }
 0x219   :  { %v707_v26 = vadd.f32 %v706_v17, %v705_v14  ;;  %v714_v27 = vadd.f32 %v713_v18, %v712_v23  ;;  %v721_v28 = vadd.f32 %v720_v19, %v719_v54  ;;  %v728_v32 = vadd.f32 %v727_v21, %v726_v25 }
 0x21a   :  { %v734_v33 = vrot.slane %v733_v22, 2  ;;  %v741_v34 = vrot.slane %v740_v24, 2 }
 0x21b   :  { %v708_v5 = vrot.slane %v707_v26, 1  ;;  %v715_v35 = vrot.slane %v714_v27, 1  ;;  %v722_v36 = vrot.slane %v721_v28, 1  ;;  %v729_v37 = vrot.slane %v728_v32, 1 }
 0x21c   :  { %v735_v38 = vadd.f32 %v734_v33, %v733_v22  ;;  %v742_v40 = vadd.f32 %v741_v34, %v740_v24 }
 0x21d   :  { %v709_v41 = vadd.f32 %v708_v5, %v707_v26  ;;  %v716_v42 = vadd.f32 %v715_v35, %v714_v27  ;;  %v723_v11 = vadd.f32 %v722_v36, %v721_v28  ;;  %v730_v43 = vadd.f32 %v729_v37, %v728_v32 }
 0x21e   :  { %v736_v44 = vrot.slane %v735_v38, 1  ;;  %v743_v45 = vrot.slane %v742_v40, 1 }
 0x21f   :  { %936 = vlog2.f32 %v709_v41 }
 0x220   :  { %v737_v20 = vadd.f32 %v736_v44, %v735_v38  ;;  %938 = vlog2.f32 %v716_v42  ;;  %v744_v49 = vadd.f32 %v743_v45, %v742_v40 }
 0x221   :  { %940 = vlog2.f32 %v723_v11 }
 0x222   :  { %942 = vlog2.f32 %v730_v43 }
 0x223   :  { %944 = vlog2.f32 %v737_v20 }
 0x224   :  { %946 = vlog2.f32 %v744_v49 }
 0x225   :  { %v937_v50 = vpop.eup %936 }
 0x226   :  { %v939_v52 = vpop.eup %938  ;;  %v747_v53 = vmul.f32 0.6931472, %v937_v50 }
 0x227   :  { %v941_v55 = vpop.eup %940  ;;  %v749_v56 = vmul.f32 0.6931472, %v939_v52 }
 0x228   :  { %v943_v57 = vpop.eup %942  ;;  %v751_v29 = vmul.f32 0.6931472, %v941_v55 }
 0x229   :  { %v945_v59 = vpop.eup %944  ;;  %v753_v60 = vmul.f32 0.6931472, %v943_v57  ;;  %v764_v61 = vsel %vm150_vm2, %v749_v56, %v747_v53 }
 0x22a   :  { %v947_v63 = vpop.eup %946  ;;  %v755_v0 = vmul.f32 0.6931472, %v945_v59  ;;  %v765_v1 = vsel %vm152_vm3, %v751_v29, %v764_v61 }
 0x22b   :  { %v766_v39 = vsel %vm154_vm4, %v753_v60, %v765_v1  ;;  %v757_v2 = vmul.f32 0.6931472, %v947_v63 }
 0x22c   :  { %v767_v3 = vsel %vm156_vm5, %v755_v0, %v766_v39 }
 0x22d   :  { %v768_v6 = vsel %vm158_vm6, %v757_v2, %v767_v3 }
 0x22e   :  { %v770_v7 = vadd.f32 %v768_v6, %v745_v4 }
 0x230   :  { %771 = vst [vmem:[#allocation2] sm:$0x3f] %v770_v7 }
 0x237   :  { %v775_v48 = vld [vmem:[#allocation2] sm:$0x3f] }
 0x238   :  { %v782_v9 = vadd.f32 %v780_v8, %v775_v48 }
 0x23a   :  { %v783_v10 = vsel %vm72_vm1, %v782_v9, -inf }
 0x23b   :  { %v784_v12 = vrot.slane %v783_v10, 4 }
 0x23d   :  { %v785_v31 = vmax.f32 %v783_v10, %v784_v12 }
 0x23f   :  { %v786_v13 = vrot.slane %v785_v31, 2 }
 0x241   :  { %v787_v47 = vmax.f32 %v785_v31, %v786_v13 }
 0x243   :  { %v788_v30 = vrot.slane %v787_v47, 1 }
 0x245   :  { %v789_v46 = vmax.f32 %v787_v47, %v788_v30 }
 0x247   :  { %v790_v14 = vsub.f32 %v782_v9, %v789_v46 }
 0x249   :  { %v791_v23 = vmul.f32 1.442695, %v790_v14 }
 0x24b   :  { %948 = vpow2.f32 %v791_v23 }
 0x251   :  { %v949_v54 = vpop.eup %948 }
 0x252   :  { %v793_v62 = vsel %vm72_vm1, %v949_v54, 0.0 }
 0x253   :  { %v794_v25 = vrot.slane %v793_v62, 4 }
 0x255   :  { %v795_v15 = vadd.f32 %v794_v25, %v793_v62 }
 0x257   :  { %v796_v16 = vrot.slane %v795_v15, 2 }
 0x259   :  { %v797_v17 = vadd.f32 %v796_v16, %v795_v15 }
 0x25b   :  { %v798_v18 = vrot.slane %v797_v17, 1 }
 0x25d   :  { %v799_v19 = vadd.f32 %v798_v18, %v797_v17 }
 0x25f   :  { %950 = vlog2.f32 %v799_v19 }
 0x265   :  { %v951_v21 = vpop.eup %950 }
 0x266   :  { %v801_v22 = vmul.f32 0.6931472, %v951_v21 }
 0x268   :  { %v802_v24 = vadd.f32 %v801_v22, %v789_v46 }
 0x26a   :  { %803 = vst [vmem:[#allocation3] sm:$0x1] %v802_v24 }
 0x26b   :  { %814 = dma.vmem_to_hbm [thread:$0]  %s810_s30, 16, %s812_s6, [#allocation4]  }
 0x26c   :  { %976 = dma.done.wait [#allocation4], 16  }
 0x26d   :  { %977 = vsyncadd [#allocation4], 4294967280 }
 0x26e   :  { %819 = vsyncpa [#allocation4], 1 }

</bundles_post_ra>
